<compile_context>
chip_gen: v5e
topology: v5e:2x2
jax: 0.10.0
libtpu: 0.0.40
codegen_flags: <defaults>
</compile_context>

<pallas_src>
import math

import jax
import jax.numpy as jnp
from jax.experimental import pallas as pl
from jax.experimental.pallas import tpu as pltpu


def _choose_row_block(total_rows, row_bytes, budget=2 << 20):
    """Largest row-tile that is a multiple of 8, divides `total_rows`, and keeps
    one (input + output) tile under `budget` bytes (so double buffering stays a
    few MiB even on v7x's 64 MiB VMEM).  Falls back to the full extent for
    small inputs (full-extent blocks are always legal)."""
    best = None
    r = 8
    while r <= total_rows:
        if total_rows % r == 0 and r * row_bytes <= budget:
            best = r
        r += 8
    return best if best is not None else total_rows


def fused_stage(mask, class_idx, w, b, gamma, beta, *, p, val_eq, val_neq):
    """Fused: encoding + patch-embed (p x p patches, 1 channel) + LayerNorm.

    mask: (B, H, W) int32; w: (p*p, C); b/gamma/beta: (C,).
    Returns (B, H//p, W//p, C) f32.
    """
    B, H, W = mask.shape
    assert H % p == 0 and W % p == 0, "spatial dims must be divisible by patch size"
    P, C = w.shape
    assert P == p * p
    hp, wp = H // p, W // p
    N = B * hp * wp                      # number of tokens

    # Pack q tokens per matrix row so the token load and the output store are
    # lane-dense (last dims are multiples of 128 when possible).
    if P <= 128 and 128 % P == 0 and N % (128 // P) == 0:
        q = 128 // P
    else:
        q = 1
    qP, qC = q * P, q * C
    num_rows = N // q

    # int32 patchify of the raw mask (one XLA transpose pass; 1/4 the bytes the
    # unfused version moved as f32 activations).  See TODO(synk) above.
    tok = (mask.reshape(B, hp, p, wp, p)
               .transpose(0, 1, 3, 2, 4)
               .reshape(num_rows, qP))

    # Two-valued-input algebra: the kernel only ever sees the 0/1 indicator.
    w_delta = (val_eq - val_neq) * w                      # (P, C)
    base = val_neq * jnp.sum(w, axis=0) + b               # (C,)

    eye_q = jnp.eye(q, dtype=jnp.float32)
    wd_big = jnp.kron(eye_q, w_delta)                     # (qP, qC) block-diag
    base_t = jnp.tile(base, q).reshape(1, qC)
    gamma_t = jnp.tile(gamma, q).reshape(1, qC)
    beta_t = jnp.tile(beta, q).reshape(1, qC)
    # group-mean / group-broadcast matrices for the per-token LayerNorm
    mavg = jnp.kron(eye_q, jnp.full((C, 1), 1.0 / C, jnp.float32))  # (qC, q)
    gbc = jnp.kron(eye_q, jnp.ones((1, C), jnp.float32))            # (q, qC)

    TN = _choose_row_block(num_rows, row_bytes=(qP + qC) * 4)
    grid = (num_rows // TN,)

    def kernel(cidx_ref, tok_ref, wd_ref, base_ref, g_ref, bta_ref,
               mavg_ref, gbc_ref, out_ref):
        # 0/1 indicator straight from the int32 mask tokens (VMEM only).
        ind = (tok_ref[...] == cidx_ref[0]).astype(jnp.float32)     # (TN, qP)
        # per-token embed (block-diagonal weight keeps tokens independent)
        y = jnp.dot(ind, wd_ref[...],
                    preferred_element_type=jnp.float32) + base_ref[...]
        # per-token LayerNorm over C channels, done on the packed (TN, q*C)
        # layout via two skinny matmuls (group mean + broadcast back).
        mean = jnp.dot(jnp.dot(y, mavg_ref[...],
                               preferred_element_type=jnp.float32),
                       gbc_ref[...], preferred_element_type=jnp.float32)
        d = y - mean
        var = jnp.dot(jnp.dot(d * d, mavg_ref[...],
                              preferred_element_type=jnp.float32),
                      gbc_ref[...], preferred_element_type=jnp.float32)
        out_ref[...] = (d * jax.lax.rsqrt(var + 1e-5)) * g_ref[...] + bta_ref[...]

    flops = (2 * num_rows * qP * qC          # embed matmul
             + 8 * num_rows * q * qC         # LN group matmuls
             + 6 * num_rows * qC)            # LN elementwise tail
    bytes_accessed = (tok.size * 4 + num_rows * qC * 4
                      + (wd_big.size + mavg.size + gbc.size + 3 * qC) * 4)
    cost = pl.CostEstimate(flops=int(flops), transcendentals=int(N),
                           bytes_accessed=int(bytes_accessed))

    out2d = pl.pallas_call(
        kernel,
        out_shape=jax.ShapeDtypeStruct((num_rows, qC), jnp.float32),
        grid_spec=pltpu.PrefetchScalarGridSpec(
            num_scalar_prefetch=1,
            grid=grid,
            in_specs=[
                pl.BlockSpec((TN, qP), lambda i, cidx: (i, 0)),   # mask tokens
                pl.BlockSpec((qP, qC), lambda i, cidx: (0, 0)),   # block-diag W
                pl.BlockSpec((1, qC), lambda i, cidx: (0, 0)),    # base
                pl.BlockSpec((1, qC), lambda i, cidx: (0, 0)),    # gamma
                pl.BlockSpec((1, qC), lambda i, cidx: (0, 0)),    # beta
                pl.BlockSpec((qC, q), lambda i, cidx: (0, 0)),    # group mean
                pl.BlockSpec((q, qC), lambda i, cidx: (0, 0)),    # group bcast
            ],
            out_specs=pl.BlockSpec((TN, qC), lambda i, cidx: (i, 0)),
        ),
        compiler_params=pltpu.CompilerParams(
            dimension_semantics=("parallel",)),
        cost_estimate=cost,
    )(jnp.asarray([class_idx], dtype=jnp.int32),
      tok, wd_big, base_t, gamma_t, beta_t, mavg, gbc)

    # tokens are in (b, patch_row, patch_col) row-major order -> free reshape,
    # equivalent to rearrange('b (h w) c -> b h w c') without the sqrt(L)
    # square-image assumption.
    return out2d.reshape(B, hp, wp, C)


class ClassAttentionV2Pallas:
    def __init__(self, embed_dims, patch_sizes, key):
        # encodings: two scalar parameters, uniform init (as in the torch module)
        k_enc, k_w = jax.random.split(key)
        enc_vals = jax.random.uniform(k_enc, (2,), dtype=jnp.float32)
        self.unknown = float(enc_vals[0])
        self.known = float(enc_vals[1])

        self.embed_dims = embed_dims
        self.patch_sizes = patch_sizes
        self.stage_params = []
        for ec, p in zip(embed_dims, patch_sizes):
            C = ec * 2                 # SwinV2 stage output channels (norms use ec*2)
            P = p * p                  # 1 input channel -> p*p patch features
            kw, kb, k_w = jax.random.split(k_w, 3)
            w = jax.random.normal(kw, (P, C), dtype=jnp.float32) * (1.0 / math.sqrt(P))
            b = jax.random.normal(kb, (C,), dtype=jnp.float32) * 0.02
            gamma = jnp.ones((C,), dtype=jnp.float32)   # nn.LayerNorm default weight
            beta = jnp.zeros((C,), dtype=jnp.float32)   # nn.LayerNorm default bias
            self.stage_params.append((w, b, gamma, beta))

    def __call__(self, mask, class_idx, negative=False):
        if negative:
            val_eq, val_neq = self.unknown, self.known
        else:
            val_eq, val_neq = self.known, self.unknown
        mask = mask.astype(jnp.int32)
        outs = []
        for (w, b, gamma, beta), p in zip(self.stage_params, self.patch_sizes):
            o = fused_stage(mask, class_idx, w, b, gamma, beta,
                            p=p, val_eq=val_eq, val_neq=val_neq)
            outs.append(o)             # (B, H//p, W//p, ec*2)
        return outs


# ---------------------------------------------------------------------------
# Pure-JAX reference for correctness checking
# ---------------------------------------------------------------------------
def reference_forward(model, mask, class_idx, negative=False):
    val_eq = model.unknown if negative else model.known
    val_neq = model.known if negative else model.unknown
    enc = jnp.where(mask == class_idx, val_eq, val_neq).astype(jnp.float32)
    B, H, W = mask.shape
    outs = []
    for (w, b, gamma, beta), p in zip(model.stage_params, model.patch_sizes):
        hp, wp = H // p, W // p
        x = (enc.reshape(B, hp, p, wp, p)
                .transpose(0, 1, 3, 2, 4)
                .reshape(B * hp * wp, p * p))
        y = x @ w + b
        mean = jnp.mean(y, axis=-1, keepdims=True)
        var = jnp.mean((y - mean) ** 2, axis=-1, keepdims=True)
        y = (y - mean) / jnp.sqrt(var + 1e-5) * gamma + beta
        outs.append(y.reshape(B, hp, wp, w.shape[1]))
    return outs


if __name__ == "__main__":
    key = jax.random.PRNGKey(0)
    k_mask, k_model = jax.random.split(key)

    B, H, W = 2, 16, 16
    embed_dims = [16, 32]       # config['embed_dims'] (small)
    patch_sizes = [4, 8]        # per-stage downsample of the backbone stand-in
    num_classes = 4
    class_idx = 1

    mask = jax.random.randint(k_mask, (B, H, W), 0, num_classes, dtype=jnp.int32)
    model = ClassAttentionV2Pallas(embed_dims, patch_sizes, k_model)

    outs = model(mask, class_idx, negative=False)
    outs = [jax.block_until_ready(o) for o in outs]
    refs = reference_forward(model, mask, class_idx, negative=False)
    for o, r in zip(outs, refs):
        assert o.shape == r.shape, (o.shape, r.shape)
        assert jnp.allclose(o, r, atol=1e-4, rtol=1e-4), "mismatch vs reference"

    # also exercise the negative=True branch once
    outs_neg = model(mask, class_idx, negative=True)
    outs_neg = [jax.block_until_ready(o) for o in outs_neg]
    refs_neg = reference_forward(model, mask, class_idx, negative=True)
    for o, r in zip(outs_neg, refs_neg):
        assert jnp.allclose(o, r, atol=1e-4, rtol=1e-4), "mismatch vs reference (negative)"

    print("KERNEL_OK")
</pallas_src>

<mosaic_0001>
module attributes {stable_mosaic.version = 11 : i64} {
  func.func @kernel(%arg0: i32, %arg1: memref<1xi32, #tpu.memory_space<smem>>, %arg2: memref<4x128xi32, #tpu.memory_space<vmem>>, %arg3: memref<128x256xf32, #tpu.memory_space<vmem>>, %arg4: memref<1x256xf32, #tpu.memory_space<vmem>>, %arg5: memref<1x256xf32, #tpu.memory_space<vmem>>, %arg6: memref<1x256xf32, #tpu.memory_space<vmem>>, %arg7: memref<256x8xf32, #tpu.memory_space<vmem>>, %arg8: memref<8x256xf32, #tpu.memory_space<vmem>>, %arg9: memref<4x256xf32, #tpu.memory_space<vmem>>) attributes {dimension_semantics = [#tpu.dimension_semantics<parallel>], iteration_bounds = array<i64: 1>, scalar_prefetch = 1 : i64, scratch_operands = 0 : i64, tpu.core_type = #tpu.core_type<tc>, window_params = [{transform_indices = @transform_0, window_bounds = array<i64: 4, 128>}, {pipeline_mode = #tpu.pipeline_mode<synchronous>, transform_indices = @transform_1, window_bounds = array<i64: 128, 256>}, {pipeline_mode = #tpu.pipeline_mode<synchronous>, transform_indices = @transform_2, window_bounds = array<i64: 1, 256>}, {pipeline_mode = #tpu.pipeline_mode<synchronous>, transform_indices = @transform_3, window_bounds = array<i64: 1, 256>}, {pipeline_mode = #tpu.pipeline_mode<synchronous>, transform_indices = @transform_4, window_bounds = array<i64: 1, 256>}, {pipeline_mode = #tpu.pipeline_mode<synchronous>, transform_indices = @transform_5, window_bounds = array<i64: 256, 8>}, {pipeline_mode = #tpu.pipeline_mode<synchronous>, transform_indices = @transform_6, window_bounds = array<i64: 8, 256>}, {transform_indices = @transform_7, window_bounds = array<i64: 4, 256>}]} {
    %c0 = arith.constant 0 : index
    %c0_0 = arith.constant 0 : index
    %0 = vector.load %arg2[%c0, %c0_0] : memref<4x128xi32, #tpu.memory_space<vmem>>, vector<4x128xi32>
    %c0_1 = arith.constant 0 : index
    %1 = memref.load %arg1[%c0_1] : memref<1xi32, #tpu.memory_space<smem>>
    %2 = vector.broadcast %1 : i32 to vector<4x128xi32>
    %3 = arith.cmpi eq, %0, %2 : vector<4x128xi32>
    %4 = arith.extui %3 : vector<4x128xi1> to vector<4x128xi32>
    %5 = arith.sitofp %4 : vector<4x128xi32> to vector<4x128xf32>
    %c0_2 = arith.constant 0 : index
    %c0_3 = arith.constant 0 : index
    %6 = vector.load %arg3[%c0_2, %c0_3] : memref<128x256xf32, #tpu.memory_space<vmem>>, vector<128x256xf32>
    %cst = arith.constant dense<0.000000e+00> : vector<4x256xf32>
    %7 = tpu.matmul %5, %6, %cst {dimension_numbers = #tpu.dot_dimension_numbers<[1], [0], [0], [1], [0, 0, 1, 1], [], []>} : vector<4x128xf32>, vector<128x256xf32>, vector<4x256xf32> -> vector<4x256xf32>
    %c0_4 = arith.constant 0 : index
    %c0_5 = arith.constant 0 : index
    %8 = vector.load %arg4[%c0_4, %c0_5] : memref<1x256xf32, #tpu.memory_space<vmem>>, vector<1x256xf32>
    %9 = vector.broadcast %8 : vector<1x256xf32> to vector<4x256xf32>
    %10 = arith.addf %7, %9 : vector<4x256xf32>
    %c0_6 = arith.constant 0 : index
    %c0_7 = arith.constant 0 : index
    %11 = vector.load %arg7[%c0_6, %c0_7] : memref<256x8xf32, #tpu.memory_space<vmem>>, vector<256x8xf32>
    %cst_8 = arith.constant dense<0.000000e+00> : vector<4x8xf32>
    %12 = tpu.matmul %10, %11, %cst_8 {dimension_numbers = #tpu.dot_dimension_numbers<[1], [0], [0], [1], [0, 0, 1, 1], [], []>} : vector<4x256xf32>, vector<256x8xf32>, vector<4x8xf32> -> vector<4x8xf32>
    %c0_9 = arith.constant 0 : index
    %c0_10 = arith.constant 0 : index
    %13 = vector.load %arg8[%c0_9, %c0_10] : memref<8x256xf32, #tpu.memory_space<vmem>>, vector<8x256xf32>
    %cst_11 = arith.constant dense<0.000000e+00> : vector<4x256xf32>
    %14 = tpu.matmul %12, %13, %cst_11 {dimension_numbers = #tpu.dot_dimension_numbers<[1], [0], [0], [1], [0, 0, 1, 1], [], []>} : vector<4x8xf32>, vector<8x256xf32>, vector<4x256xf32> -> vector<4x256xf32>
    %15 = arith.subf %10, %14 : vector<4x256xf32>
    %16 = arith.mulf %15, %15 : vector<4x256xf32>
    %c0_12 = arith.constant 0 : index
    %c0_13 = arith.constant 0 : index
    %17 = vector.load %arg7[%c0_12, %c0_13] : memref<256x8xf32, #tpu.memory_space<vmem>>, vector<256x8xf32>
    %cst_14 = arith.constant dense<0.000000e+00> : vector<4x8xf32>
    %18 = tpu.matmul %16, %17, %cst_14 {dimension_numbers = #tpu.dot_dimension_numbers<[1], [0], [0], [1], [0, 0, 1, 1], [], []>} : vector<4x256xf32>, vector<256x8xf32>, vector<4x8xf32> -> vector<4x8xf32>
    %c0_15 = arith.constant 0 : index
    %c0_16 = arith.constant 0 : index
    %19 = vector.load %arg8[%c0_15, %c0_16] : memref<8x256xf32, #tpu.memory_space<vmem>>, vector<8x256xf32>
    %cst_17 = arith.constant dense<0.000000e+00> : vector<4x256xf32>
    %20 = tpu.matmul %18, %19, %cst_17 {dimension_numbers = #tpu.dot_dimension_numbers<[1], [0], [0], [1], [0, 0, 1, 1], [], []>} : vector<4x8xf32>, vector<8x256xf32>, vector<4x256xf32> -> vector<4x256xf32>
    %cst_18 = arith.constant 9.99999974E-6 : f32
    %21 = vector.broadcast %cst_18 : f32 to vector<4x256xf32>
    %22 = arith.addf %20, %21 : vector<4x256xf32>
    %23 = math.rsqrt %22 : vector<4x256xf32>
    %24 = arith.mulf %15, %23 : vector<4x256xf32>
    %c0_19 = arith.constant 0 : index
    %c0_20 = arith.constant 0 : index
    %25 = vector.load %arg5[%c0_19, %c0_20] : memref<1x256xf32, #tpu.memory_space<vmem>>, vector<1x256xf32>
    %26 = vector.broadcast %25 : vector<1x256xf32> to vector<4x256xf32>
    %27 = arith.mulf %24, %26 : vector<4x256xf32>
    %c0_21 = arith.constant 0 : index
    %c0_22 = arith.constant 0 : index
    %28 = vector.load %arg6[%c0_21, %c0_22] : memref<1x256xf32, #tpu.memory_space<vmem>>, vector<1x256xf32>
    %29 = vector.broadcast %28 : vector<1x256xf32> to vector<4x256xf32>
    %30 = arith.addf %27, %29 : vector<4x256xf32>
    %c0_23 = arith.constant 0 : index
    %c0_24 = arith.constant 0 : index
    %31 = vector.load %arg9[%c0_23, %c0_24] : memref<4x256xf32, #tpu.memory_space<vmem>>, vector<4x256xf32>
    tpu.vector_store %arg9[%c0_23, %c0_24], %30 {strides = array<i32>} : memref<4x256xf32, #tpu.memory_space<vmem>>, vector<4x256xf32>,
    return
  }
  func.func @transform_0(%arg0: i32, %arg1: memref<1xi32, #tpu.memory_space<smem>>) -> (i32, i32) {
    %c0_i32 = arith.constant 0 : i32
    %c0_i32_0 = arith.constant 0 : i32
    return %arg0, %c0_i32 : i32, i32
  }
  func.func @transform_1(%arg0: i32, %arg1: memref<1xi32, #tpu.memory_space<smem>>) -> (i32, i32) {
    %c0_i32 = arith.constant 0 : i32
    %c0_i32_0 = arith.constant 0 : i32
    %c0_i32_1 = arith.constant 0 : i32
    return %c0_i32, %c0_i32_0 : i32, i32
  }
  func.func @transform_2(%arg0: i32, %arg1: memref<1xi32, #tpu.memory_space<smem>>) -> (i32, i32) {
    %c0_i32 = arith.constant 0 : i32
    %c0_i32_0 = arith.constant 0 : i32
    %c0_i32_1 = arith.constant 0 : i32
    return %c0_i32, %c0_i32_0 : i32, i32
  }
  func.func @transform_3(%arg0: i32, %arg1: memref<1xi32, #tpu.memory_space<smem>>) -> (i32, i32) {
    %c0_i32 = arith.constant 0 : i32
    %c0_i32_0 = arith.constant 0 : i32
    %c0_i32_1 = arith.constant 0 : i32
    return %c0_i32, %c0_i32_0 : i32, i32
  }
  func.func @transform_4(%arg0: i32, %arg1: memref<1xi32, #tpu.memory_space<smem>>) -> (i32, i32) {
    %c0_i32 = arith.constant 0 : i32
    %c0_i32_0 = arith.constant 0 : i32
    %c0_i32_1 = arith.constant 0 : i32
    return %c0_i32, %c0_i32_0 : i32, i32
  }
  func.func @transform_5(%arg0: i32, %arg1: memref<1xi32, #tpu.memory_space<smem>>) -> (i32, i32) {
    %c0_i32 = arith.constant 0 : i32
    %c0_i32_0 = arith.constant 0 : i32
    %c0_i32_1 = arith.constant 0 : i32
    return %c0_i32, %c0_i32_0 : i32, i32
  }
  func.func @transform_6(%arg0: i32, %arg1: memref<1xi32, #tpu.memory_space<smem>>) -> (i32, i32) {
    %c0_i32 = arith.constant 0 : i32
    %c0_i32_0 = arith.constant 0 : i32
    %c0_i32_1 = arith.constant 0 : i32
    return %c0_i32, %c0_i32_0 : i32, i32
  }
  func.func @transform_7(%arg0: i32, %arg1: memref<1xi32, #tpu.memory_space<smem>>) -> (i32, i32) {
    %c0_i32 = arith.constant 0 : i32
    %c0_i32_0 = arith.constant 0 : i32
    return %arg0, %c0_i32 : i32, i32
  }
}

</mosaic_0001>

<bundles_post_ra>
// kernel: tpu_custom_call.1
= control target key start
LH: loop header
LB: loop body
LE: loop exit
PB: predicated region body
PF: predicated region fallthrough
CT: control target
= control target key end

     0   :  { %14 = vsyncpa [#allocation5], 0  ;;  %s851_s0 = inlined_call_operand.<no memory space> [shape: s32[1], index: 0, kind: input, shape index: {}]   ;;  %s852_s1 = inlined_call_operand.hbm [shape: s32[4,128], index: 1, kind: input, shape index: {}]   ;;  %s853_s2 = inlined_call_operand.vmem [shape: f32[128,256], index: 2, kind: input, shape index: {}]   ;;  %s854_s3 = inlined_call_operand.vmem [shape: f32[1,256], index: 3, kind: input, shape index: {}]   ;;  %s855_s4 = inlined_call_operand.hbm [shape: f32[1,256], index: 4, kind: input, shape index: {}]   ;;  %s856_s5 = inlined_call_operand.vmem [shape: f32[1,256], index: 5, kind: input, shape index: {}]   ;;  %s857_s6 = inlined_call_operand.vmem [shape: f32[256,8], index: 6, kind: input, shape index: {}]   ;;  %s858_s7 = inlined_call_operand.vmem [shape: f32[8,256], index: 7, kind: input, shape index: {}]   ;;  %s859_s8 = inlined_call_operand.hbm [shape: f32[4,256], index: 8, kind: output, shape index: {}]  }
   0x1   :  { %15 = vsyncpa [#allocation8], 0 }
   0x2   :  { %16 = vsyncpa [#allocation6], 0  ;;  %s22_s29 = sshll.u32 %s852_s1, 4  ;;  %s502_s30 = smov [#allocation4]   ;;  %s23_s29 = int_to_ptr.hbm [resolvable:$true] %s22_s29 }
   0x3   :  { %s24_s9 = sshll.u32 %s502_s30, 4  ;;  %s37_s12 = sshll.u32 %s855_s4, 4  ;;  %s25_s9 = int_to_ptr.vmem [resolvable:$true] %s24_s9  ;;  %s38_s12 = int_to_ptr.hbm [resolvable:$true] %s37_s12 }
   0x4   :  { %27 = dma.hbm_to_vmem [thread:$0]  %s23_s29, 64, %s25_s9, [#allocation5]  }
   0x5   :  { %s503_s13 = smov [#allocation7]  }
   0x6   :  { %s39_s14 = sshll.u32 %s503_s13, 4  ;;  %s40_s14 = int_to_ptr.vmem [resolvable:$true] %s39_s14 }
   0x7   :  { %42 = dma.hbm_to_vmem [thread:$0]  %s38_s12, 32, %s40_s14, [#allocation8]  }
   0x8   :  { %496 = dma.done.wait [#allocation5], 64  }
   0x9   :  { %497 = vsyncadd [#allocation5], 4294967232 }
   0xa   :  { %498 = dma.done.wait [#allocation8], 32  }
   0xb   :  { %499 = vsyncadd [#allocation8], 4294967264  ;;  %v93_v0 = vld [vmem:[%s853_s2 + $0xf0] sm:$0xff]  ;;  %v94_v1 = vld [vmem:[%s853_s2 + $0xf8] sm:$0xff]  ;;  %v59_v49 = vstv %s851_s0  ;;  %v504_v56 = vmov 1.0   ;;  %vm215_vm1 = vcmask 64512  }
   0xc   :  { %v91_v2 = vld [vmem:[%s853_s2 + $0xe0] sm:$0xff]  ;;  %101 = vmatpush.msra.mxu0 %v93_v0  ;;  %121 = vmatpush.msra.mxu1 %v94_v1  ;;  %v92_v3 = vld [vmem:[%s853_s2 + $0xe8] sm:$0xff]  ;;  %v89_v4 = vld [vmem:[%s853_s2 + $0xd0] sm:$0xff]  ;;  %s505_s25 = smov [#allocation9]   ;;  %s398_s28 = sshll.u32 %s859_s8, 4  ;;  %vm387_vm8 = vcmask 1043456   ;;  %s399_s28 = int_to_ptr.hbm [resolvable:$true] %s398_s28 }
   0xd   :  { %v90_v5 = vld [vmem:[%s853_s2 + $0xd8] sm:$0xff]  ;;  %v87_v6 = vld [vmem:[%s853_s2 + $0xc0] sm:$0xff]  ;;  %v88_v7 = vld [vmem:[%s853_s2 + $0xc8] sm:$0xff] }
   0xe   :  { %102 = vmatpush.msra.mxu0 %v91_v2  ;;  %122 = vmatpush.msra.mxu1 %v92_v3  ;;  %v85_v8 = vld [vmem:[%s853_s2 + $0xb0] sm:$0xff]  ;;  %v86_v9 = vld [vmem:[%s853_s2 + $0xb8] sm:$0xff]  ;;  %v83_v10 = vld [vmem:[%s853_s2 + $0xa0] sm:$0xff] }
   0xf   :  { %v84_v11 = vld [vmem:[%s853_s2 + $0xa8] sm:$0xff]  ;;  %v81_v12 = vld [vmem:[%s853_s2 + $0x90] sm:$0xff]  ;;  %v82_v13 = vld [vmem:[%s853_s2 + $0x98] sm:$0xff] }
  0x10   :  { %103 = vmatpush.msra.mxu0 %v89_v4  ;;  %123 = vmatpush.msra.mxu1 %v90_v5  ;;  %v602_v14 = vld [vmem:[%s857_s6 + $0x78] sm:$0xff]  ;;  %v612_v16 = vld [vmem:[%s857_s6 + $0x70] sm:$0xff]  ;;  %v79_v17 = vld [vmem:[%s853_s2 + $0x80] sm:$0xff] }
  0x11   :  { %v607_v15 = vld [vmem:[%s857_s6 + $0xf8] sm:$0xff]  ;;  %v80_v18 = vld [vmem:[%s853_s2 + $0x88] sm:$0xff]  ;;  %173 = vmatpush.msra.mxu2 %v602_v14  ;;  %v625_v19 = vld [vmem:[%s857_s6 + $0xf0] sm:$0xff] }
  0x12   :  { %104 = vmatpush.msra.mxu0 %v87_v6  ;;  %124 = vmatpush.msra.mxu1 %v88_v7  ;;  %v630_v20 = vld [vmem:[%s857_s6 + $0x68] sm:$0xff]  ;;  %v77_v22 = vld [vmem:[%s853_s2 + $0x70] sm:$0xff]  ;;  %v78_v23 = vld [vmem:[%s853_s2 + $0x78] sm:$0xff] }
  0x13   :  { %193 = vmatpush.msra.mxu3 %v607_v15  ;;  %v635_v21 = vld [vmem:[%s857_s6 + $0xe8] sm:$0xff]  ;;  %174 = vmatpush.msra.mxu2 %v612_v16  ;;  %v648_v24 = vld [vmem:[%s857_s6 + $0x60] sm:$0xff]  ;;  %v666_v28 = vld [vmem:[%s857_s6 + $0x58] sm:$0xff] }
  0x14   :  { %105 = vmatpush.msra.mxu0 %v85_v8  ;;  %125 = vmatpush.msra.mxu1 %v86_v9  ;;  %v653_v25 = vld [vmem:[%s857_s6 + $0xe0] sm:$0xff]  ;;  %v76_v27 = vld [vmem:[%s853_s2 + $0x68] sm:$0xff]  ;;  %v671_v29 = vld [vmem:[%s857_s6 + $0xd8] sm:$0xff] }
  0x15   :  { %194 = vmatpush.msra.mxu3 %v625_v19  ;;  %v75_v26 = vld [vmem:[%s853_s2 + $0x60] sm:$0xff]  ;;  %175 = vmatpush.msra.mxu2 %v630_v20  ;;  %v73_v30 = vld [vmem:[%s853_s2 + $0x50] sm:$0xff]  ;;  %v74_v31 = vld [vmem:[%s853_s2 + $0x58] sm:$0xff] }
  0x16   :  { %106 = vmatpush.msra.mxu0 %v83_v10  ;;  %126 = vmatpush.msra.mxu1 %v84_v11  ;;  %v684_v32 = vld [vmem:[%s857_s6 + $0x50] sm:$0xff]  ;;  %v71_v34 = vld [vmem:[%s853_s2 + $0x40] sm:$0xff]  ;;  %v72_v35 = vld [vmem:[%s853_s2 + $0x48] sm:$0xff] }
  0x17   :  { %195 = vmatpush.msra.mxu3 %v635_v21  ;;  %176 = vmatpush.msra.mxu2 %v648_v24  ;;  %v689_v33 = vld [vmem:[%s857_s6 + $0xd0] sm:$0xff]  ;;  %v702_v36 = vld [vmem:[%s857_s6 + $0x48] sm:$0xff]  ;;  %v70_v39 = vld [vmem:[%s853_s2 + $0x38] sm:$0xff] }
  0x18   :  { %107 = vmatpush.msra.mxu0 %v81_v12  ;;  %127 = vmatpush.msra.mxu1 %v82_v13  ;;  %v707_v37 = vld [vmem:[%s857_s6 + $0xc8] sm:$0xff]  ;;  %v69_v38 = vld [vmem:[%s853_s2 + $0x30] sm:$0xff]  ;;  %v720_v40 = vld [vmem:[%s857_s6 + $0x40] sm:$0xff] }
  0x19   :  { %196 = vmatpush.msra.mxu3 %v653_v25  ;;  %177 = vmatpush.msra.mxu2 %v666_v28  ;;  %v725_v41 = vld [vmem:[%s857_s6 + $0xc0] sm:$0xff]  ;;  %v68_v43 = vld [vmem:[%s853_s2 + $0x28] sm:$0xff]  ;;  %v738_v44 = vld [vmem:[%s857_s6 + $0x38] sm:$0xff] }
  0x1a   :  { %108 = vmatpush.msra.mxu0 %v79_v17  ;;  %128 = vmatpush.msra.mxu1 %v80_v18  ;;  %v67_v42 = vld [vmem:[%s853_s2 + $0x20] sm:$0xff]  ;;  %v743_v45 = vld [vmem:[%s857_s6 + $0xb8] sm:$0xff]  ;;  %v65_v46 = vld [vmem:[%s853_s2 + $0x10] sm:$0xff] }
  0x1b   :  { %197 = vmatpush.msra.mxu3 %v671_v29  ;;  %178 = vmatpush.msra.mxu2 %v684_v32  ;;  %v66_v47 = vld [vmem:[%s853_s2 + $0x18] sm:$0xff]  ;;  %v57_v48 = vld [vmem:[#allocation4] sm:$0xf]  ;;  %v759_v50 = vld [vmem:[%s857_s6 + $0x30] sm:$0xff] }
  0x1c   :  { %109 = vmatpush.msra.mxu0 %v77_v22  ;;  %129 = vmatpush.msra.mxu1 %v78_v23  ;;  %v764_v51 = vld [vmem:[%s857_s6 + $0xb0] sm:$0xff]  ;;  %v63_v52 = vld [vmem:[%s853_s2] sm:$0xff]  ;;  %v64_v53 = vld [vmem:[%s853_s2 + $0x8] sm:$0xff]  ;;  %vm60_vm0 = vcmp.eq.s32.totalorder %v57_v48, %v59_v49  ;;  %s396_s2 = sshll.u32 %s505_s25, 4  ;;  %s397_s2 = int_to_ptr.vmem [resolvable:$true] %s396_s2 }
  0x1d   :  { %198 = vmatpush.msra.mxu3 %v689_v33  ;;  %179 = vmatpush.msra.mxu2 %v702_v36  ;;  %v146_v54 = vld [vmem:[%s857_s6 + $0x28] sm:$0xff]  ;;  %v145_v57 = vld [vmem:[%s857_s6 + $0x20] sm:$0xff]  ;;  %v144_v59 = vld [vmem:[%s857_s6 + $0x18] sm:$0xff] }
  0x1e   :  { %110 = vmatpush.msra.mxu0 %v75_v26  ;;  %130 = vmatpush.msra.mxu1 %v76_v27  ;;  %v162_v55 = vld [vmem:[%s857_s6 + $0xa8] sm:$0xff]  ;;  %v161_v58 = vld [vmem:[%s857_s6 + $0xa0] sm:$0xff]  ;;  %v160_v60 = vld [vmem:[%s857_s6 + $0x98] sm:$0xff] }
  0x1f   :  { %199 = vmatpush.msra.mxu3 %v707_v37  ;;  %180 = vmatpush.msra.mxu2 %v720_v40  ;;  %v143_v61 = vld [vmem:[%s857_s6 + $0x10] sm:$0xff]  ;;  %v142_v63 = vld [vmem:[%s857_s6 + $0x8] sm:$0xff]  ;;  %v141_v1 = vld [vmem:[%s857_s6] sm:$0xff] }
  0x20   :  { %111 = vmatpush.msra.mxu0 %v73_v30  ;;  %131 = vmatpush.msra.mxu1 %v74_v31  ;;  %v159_v62 = vld [vmem:[%s857_s6 + $0x90] sm:$0xff]  ;;  %v158_v0 = vld [vmem:[%s857_s6 + $0x88] sm:$0xff]  ;;  %v157_v2 = vld [vmem:[%s857_s6 + $0x80] sm:$0xff] }
  0x21   :  { %200 = vmatpush.msra.mxu3 %v725_v41  ;;  %181 = vmatpush.msra.mxu2 %v738_v44  ;;  %v213_v3 = vld [vmem:[%s858_s7] sm:$0xff]  ;;  %v214_v4 = vld [vmem:[%s858_s7 + $0x8] sm:$0xff] }
  0x22   :  { %112 = vmatpush.msra.mxu0 %v71_v34  ;;  %132 = vmatpush.msra.mxu1 %v72_v35  ;;  %v95_v5 = vld [vmem:[%s854_s3] sm:$0x3] }
  0x23   :  { %201 = vmatpush.msra.mxu3 %v743_v45  ;;  %182 = vmatpush.msra.mxu2 %v759_v50  ;;  %v97_v6 = vperm.slane %v95_v5, 0  ;;  %v98_v7 = vperm.slane %v95_v5, 1 }
  0x24   :  { %113 = vmatpush.msra.mxu0 %v69_v38  ;;  %133 = vmatpush.msra.mxu1 %v70_v39 }
  0x25   :  { %202 = vmatpush.msra.mxu3 %v764_v51  ;;  %183 = vmatpush.msra.mxu2 %v146_v54 }
  0x26   :  { %114 = vmatpush.msra.mxu0 %v67_v42  ;;  %134 = vmatpush.msra.mxu1 %v68_v43 }
  0x27   :  { %203 = vmatpush.msra.mxu3 %v162_v55  ;;  %184 = vmatpush.msra.mxu2 %v145_v57 }
  0x28   :  { %115 = vmatpush.msra.mxu0 %v65_v46  ;;  %135 = vmatpush.msra.mxu1 %v66_v47 }
  0x29   :  { %204 = vmatpush.msra.mxu3 %v161_v58  ;;  %185 = vmatpush.msra.mxu2 %v144_v59 }
  0x2a   :  { %116 = vmatpush.msra.mxu0 %v63_v52  ;;  %136 = vmatpush.msra.mxu1 %v64_v53 }
  0x2b   :  { %410 = vmatmul.msk.f32.vlgmr.msra.gmra.mxu0 %vm60_vm0, %v504_v56  ;;  %411 = vmatmul.msk.f32.vlgmr.msra.gmra.mxu1 %vm60_vm0, %v504_v56 }
  0x2c   :  { %205 = vmatpush.msra.mxu3 %v160_v60  ;;  %186 = vmatpush.msra.mxu2 %v143_v61 }
  0x2d   :  { %234 = vmatpush.msrb.mxu0 %v213_v3  ;;  %254 = vmatpush.msrb.mxu1 %v214_v4 }
  0x2e   :  { %206 = vmatpush.msra.mxu3 %v159_v62  ;;  %187 = vmatpush.msra.mxu2 %v142_v63 }
  0x2f   :  { %341 = vmatpush.msra.mxu1 %v214_v4  ;;  %321 = vmatpush.msra.mxu0 %v213_v3 }
  0x30   :  { %207 = vmatpush.msra.mxu3 %v158_v0  ;;  %188 = vmatpush.msra.mxu2 %v141_v1 }
  0x32   :  { %208 = vmatpush.msra.mxu3 %v157_v2  ;;  %263 = vmatpush.msrb.mxu2 %v602_v14 }
  0x34   :  { %283 = vmatpush.msrb.mxu3 %v607_v15  ;;  %264 = vmatpush.msrb.mxu2 %v612_v16 }
  0x36   :  { %284 = vmatpush.msrb.mxu3 %v625_v19  ;;  %265 = vmatpush.msrb.mxu2 %v630_v20 }
  0x38   :  { %285 = vmatpush.msrb.mxu3 %v635_v21  ;;  %266 = vmatpush.msrb.mxu2 %v648_v24 }
  0x3a   :  { %286 = vmatpush.msrb.mxu3 %v653_v25  ;;  %267 = vmatpush.msrb.mxu2 %v666_v28 }
  0x3c   :  { %287 = vmatpush.msrb.mxu3 %v671_v29  ;;  %268 = vmatpush.msrb.mxu2 %v684_v32 }
  0x3e   :  { %288 = vmatpush.msrb.mxu3 %v689_v33  ;;  %269 = vmatpush.msrb.mxu2 %v702_v36 }
  0x40   :  { %289 = vmatpush.msrb.mxu3 %v707_v37  ;;  %270 = vmatpush.msrb.mxu2 %v720_v40  ;;  %v368_v37 = vld [vmem:[#allocation7] sm:$0x3] }
  0x41   :  { %v370_v43 = vperm.slane %v368_v37, 0 }
  0x42   :  { %290 = vmatpush.msrb.mxu3 %v725_v41  ;;  %271 = vmatpush.msrb.mxu2 %v738_v44  ;;  %v376_v41 = vld [vmem:[%s856_s5] sm:$0x3]  ;;  %v371_v44 = vperm.slane %v368_v37, 1 }
  0x43   :  { %v379_v48 = vperm.slane %v376_v41, 1 }
  0x44   :  { %291 = vmatpush.msrb.mxu3 %v743_v45  ;;  %272 = vmatpush.msrb.mxu2 %v759_v50 }
  0x46   :  { %292 = vmatpush.msrb.mxu3 %v764_v51  ;;  %273 = vmatpush.msrb.mxu2 %v146_v54  ;;  %v378_v51 = vperm.slane %v376_v41, 0 }
  0x48   :  { %293 = vmatpush.msrb.mxu3 %v162_v55  ;;  %274 = vmatpush.msrb.mxu2 %v145_v57 }
  0x4a   :  { %294 = vmatpush.msrb.mxu3 %v161_v58  ;;  %275 = vmatpush.msrb.mxu2 %v144_v59 }
  0x4c   :  { %295 = vmatpush.msrb.mxu3 %v160_v60  ;;  %276 = vmatpush.msrb.mxu2 %v143_v61 }
  0x4e   :  { %296 = vmatpush.msrb.mxu3 %v159_v62  ;;  %277 = vmatpush.msrb.mxu2 %v142_v63 }
  0x50   :  { %297 = vmatpush.msrb.mxu3 %v158_v0  ;;  %278 = vmatpush.msrb.mxu2 %v141_v1 }
  0x52   :  { %298 = vmatpush.msrb.mxu3 %v157_v2 }
  0xa8   :  { %v118_v8 = vpop.f32.mrf.mxu0  ;;  %v138_v9 = vpop.f32.mrf.mxu1 }
  0xa9   :  { %v119_v10 = vadd.f32 %v118_v8, %v97_v6  ;;  %v139_v11 = vadd.f32 %v138_v9, %v98_v7 }
  0xab   :  { %189 = vmatmul.f32.vlgmr.msra.gmra.mxu2 %v119_v10  ;;  %209 = vmatmul.f32.vlgmr.msra.gmra.mxu3 %v139_v11 }
 0x12e   :  { %v190_v12 = vpop.f32.mrf.mxu2  ;;  %v210_v13 = vpop.f32.mrf.mxu3 }
 0x12f   :  { %v211_v14 = vadd.f32 %v210_v13, %v190_v12 }
 0x131   :  { %412 = vmatmul.msk.f32.vlgmr.msrb.gmra.mxu0 %vm215_vm1, %v211_v14  ;;  %413 = vmatmul.msk.f32.vlgmr.msrb.gmra.mxu1 %vm215_vm1, %v211_v14 }
 0x1ae   :  { %v236_v15 = vpop.f32.mrf.mxu0  ;;  %v256_v16 = vpop.f32.mrf.mxu1 }
 0x1af   :  { %v259_v17 = vsub.f32 %v119_v10, %v236_v15  ;;  %v260_v18 = vsub.f32 %v139_v11, %v256_v16 }
 0x1b1   :  { %v261_v19 = vmul.f32 %v259_v17, %v259_v17  ;;  %v262_v20 = vmul.f32 %v260_v18, %v260_v18 }
 0x1b3   :  { %279 = vmatmul.f32.vlgmr.msrb.gmra.mxu2 %v261_v19  ;;  %299 = vmatmul.f32.vlgmr.msrb.gmra.mxu3 %v262_v20 }
 0x236   :  { %v280_v21 = vpop.f32.mrf.mxu2  ;;  %v300_v22 = vpop.f32.mrf.mxu3 }
 0x237   :  { %v301_v23 = vadd.f32 %v300_v22, %v280_v21 }
 0x239   :  { %414 = vmatmul.msk.f32.vlgmr.msra.gmra.mxu0 %vm215_vm1, %v301_v23  ;;  %415 = vmatmul.msk.f32.vlgmr.msra.gmra.mxu1 %vm215_vm1, %v301_v23 }
 0x2b6   :  { %v323_v24 = vpop.f32.mrf.mxu0  ;;  %v343_v25 = vpop.f32.mrf.mxu1 }
 0x2b7   :  { %v324_v26 = vadd.f32 1e-05, %v323_v24  ;;  %v344_v27 = vadd.f32 1e-05, %v343_v25 }
 0x2b9   :  { %420 = vrsqrt.f32 %v324_v26  ;;  %vm352_vm4 = vweird.f32 %v324_v26  ;;  %vm362_vm6 = vweird.f32 %v344_v27 }
 0x2ba   :  { %422 = vrsqrt.f32 %v344_v27 }
 0x2bf   :  { %v421_v28 = vpop.eup %420 }
 0x2c0   :  { %v423_v29 = vpop.eup %422  ;;  %v347_v30 = vmul.f32 %v421_v28, %v324_v26  ;;  %vm353_vm2 = vweird.f32 %v421_v28 }
 0x2c1   :  { %v357_v31 = vmul.f32 %v423_v29, %v344_v27  ;;  %vm363_vm3 = vweird.f32 %v423_v29  ;;  %vm354_vm5 = vmor %vm352_vm4, %vm353_vm2 }
 0x2c2   :  { %v348_v32 = vmul.f32 %v421_v28, %v347_v30  ;;  %vm364_vm7 = vmor %vm362_vm6, %vm363_vm3 }
 0x2c3   :  { %v358_v33 = vmul.f32 %v423_v29, %v357_v31 }
 0x2c4   :  { %v349_v34 = vmul.f32 0.5, %v348_v32 }
 0x2c5   :  { %v359_v35 = vmul.f32 0.5, %v358_v33 }
 0x2c6   :  { %v350_v36 = vsub.f32 1.5, %v349_v34 }
 0x2c7   :  { %v360_v38 = vsub.f32 1.5, %v359_v35 }
 0x2c8   :  { %v351_v39 = vmul.f32 %v421_v28, %v350_v36 }
 0x2c9   :  { %v361_v40 = vmul.f32 %v423_v29, %v360_v38 }
 0x2ca   :  { %v355_v42 = vsel %vm354_vm5, %v421_v28, %v351_v39 }
 0x2cb   :  { %v366_v45 = vmul.f32 %v355_v42, %v259_v17  ;;  %v365_v46 = vsel %vm364_vm7, %v423_v29, %v361_v40 }
 0x2cc   :  { %v367_v47 = vmul.f32 %v365_v46, %v260_v18 }
 0x2cd   :  { %v374_v49 = vmul.f32 %v370_v43, %v366_v45 }
 0x2ce   :  { %v375_v50 = vmul.f32 %v371_v44, %v367_v47 }
 0x2cf   :  { %v382_v53 = vadd.f32 %v378_v51, %v374_v49 }
 0x2d0   :  { %v383_v52 = vadd.f32 %v379_v48, %v375_v50 }
 0x2d2   :  { %v386_v54 = vrot.slane %v383_v52, 4 }
 0x2d4   :  { %v388_v55 = vsel %vm387_vm8, %v382_v53, %v386_v54 }
 0x2d5   :  { %390 = vst [vmem:[#allocation9] sm:$0xff] %v388_v55 }
 0x2d6   :  { %401 = dma.vmem_to_hbm [thread:$0]  %s397_s2, 128, %s399_s28, [#allocation6]  }
 0x2d7   :  { %500 = dma.done.wait [#allocation6], 128  }
 0x2d8   :  { %501 = vsyncadd [#allocation6], 4294967168 }
 0x2d9   :  { %406 = vsyncpa [#allocation5], 1 }
 0x2da   :  { %407 = vsyncpa [#allocation8], 1 }
 0x2db   :  { %408 = vsyncpa [#allocation6], 1 }

</bundles_post_ra>
